<compile_context>
chip_gen: v7x
topology: tpu7x:2x2x1
jax: 0.10.0
libtpu: 0.0.40
codegen_flags: <defaults>
</compile_context>

<pallas_src>
import jax
import jax.numpy as jnp
from jax import lax
from jax.experimental import pallas as pl
from jax.experimental.pallas import tpu as pltpu


def _round_up(x, m):
    return ((x + m - 1) // m) * m


def bert_classifier_kernel(
    tok_ids_ref,   # [TB*S, 1] int32
    seg_ids_ref,   # [TB*S, 1] int32
    vlen_ref,      # [TB, 1]   int32
    tok_tab_ref,   # [V_pad, H_pad] f32   (resident)
    seg_tab_ref,   # [2, H_pad]     f32   (resident)
    wpool_ref,     # [H_pad, H_pad] bf16  (resident)
    bpool_ref,     # [1, H_pad]     f32
    wcls_ref,      # [H_pad, C_pad] bf16  (resident)
    bcls_ref,      # [1, C_pad]     f32
    out_ref,       # [TB, C_pad]    f32
):
    TB, _ = out_ref.shape
    S = tok_ids_ref.shape[0] // TB
    V_pad, H_pad = tok_tab_ref.shape

    # ---- embedding lookup: resident tables, one-hot MXU gather + VPU blend ----
    tok = tok_ids_ref[...]                                              # [TB*S, 1]
    vocab_iota = lax.broadcasted_iota(jnp.int32, (TB * S, V_pad), 1)
    onehot = (tok == vocab_iota).astype(jnp.float32)                    # [TB*S, V_pad]
    emb_tok = jnp.dot(onehot, tok_tab_ref[...],
                      preferred_element_type=jnp.float32)               # [TB*S, H_pad]

    segf = seg_ids_ref[...].astype(jnp.float32)                         # [TB*S, 1]
    seg_tab = seg_tab_ref[...]
    seg0 = seg_tab[0:1, :]                                              # [1, H_pad]
    seg1 = seg_tab[1:2, :]
    emb_seg = (1.0 - segf) * seg0 + segf * seg1                         # [TB*S, H_pad]

    emb = (emb_tok + emb_seg).reshape(TB, S, H_pad)                     # [TB, S, H_pad]

    # ---- gen_attention_mask + masked mean pool (pure VPU/XLU, no block-diag matmul) ----
    pos = lax.broadcasted_iota(jnp.int32, (TB, S, 1), 1)                # [TB, S, 1]
    vlen = vlen_ref[...].reshape(TB, 1, 1)                              # [TB, 1, 1]
    mask = (pos < vlen).astype(jnp.float32)                             # [TB, S, 1]

    count = jnp.sum(mask, axis=1)                                       # [TB, 1]
    summed = jnp.sum(emb * mask, axis=1)                                # [TB, H_pad]
    # approx reciprocal (EUP): ~1e-3 rel error vs exact division; padded rows have
    # count 0 -> guarded by the max() and sliced off in the wrapper.
    mean = summed * pl.reciprocal(jnp.maximum(count, 1.0), approx=True)

    # ---- pooler: tanh(dense) (stand-in for the external BERT pooler head) ----
    pooled = jnp.tanh(
        jnp.dot(mean.astype(wpool_ref.dtype), wpool_ref[...],
                preferred_element_type=jnp.float32)
        + bpool_ref[...])                                               # [TB, H_pad]

    # dropout (dr_rate) is identity at inference.

    # ---- classifier: nn.Linear(hidden_size, num_classes) ----
    logits = (jnp.dot(pooled.astype(wcls_ref.dtype), wcls_ref[...],
                      preferred_element_type=jnp.float32)
              + bcls_ref[...])                                          # [TB, C_pad]
    out_ref[...] = logits.astype(out_ref.dtype)


def bert_classifier_forward(token_ids, valid_length, segment_ids, params, *, tile_b=128):
    tok_tab, seg_tab, w_pool, b_pool, w_cls, b_cls = params

    B, S = token_ids.shape
    V, H = tok_tab.shape
    C = w_cls.shape[1]

    # Lane-dense padding (mathematically exact: padded rows/cols are zero and the
    # padded pooled features come out as tanh(0)=0, contributing nothing to logits).
    H_pad = _round_up(H, 128)
    C_pad = _round_up(C, 128)
    V_pad = _round_up(V, 128)           # one-hot contraction dim; pad rows never selected
    TB = max(8, min(tile_b, _round_up(B, 8)))
    B_pad = _round_up(B, TB)

    tok_flat = jnp.pad(token_ids.astype(jnp.int32),
                       ((0, B_pad - B), (0, 0))).reshape(B_pad * S, 1)
    seg_flat = jnp.pad(segment_ids.astype(jnp.int32),
                       ((0, B_pad - B), (0, 0))).reshape(B_pad * S, 1)
    vlen_col = jnp.pad(valid_length.astype(jnp.int32), (0, B_pad - B)).reshape(B_pad, 1)

    tok_tab_p = jnp.pad(tok_tab.astype(jnp.float32), ((0, V_pad - V), (0, H_pad - H)))
    seg_tab_p = jnp.pad(seg_tab.astype(jnp.float32), ((0, 0), (0, H_pad - H)))
    w_pool_p = jnp.pad(w_pool.astype(jnp.float32),
                       ((0, H_pad - H), (0, H_pad - H))).astype(jnp.bfloat16)
    b_pool_p = jnp.pad(b_pool.reshape(1, H).astype(jnp.float32), ((0, 0), (0, H_pad - H)))
    w_cls_p = jnp.pad(w_cls.astype(jnp.float32),
                      ((0, H_pad - H), (0, C_pad - C))).astype(jnp.bfloat16)
    b_cls_p = jnp.pad(b_cls.reshape(1, C).astype(jnp.float32), ((0, 0), (0, C_pad - C)))

    grid_spec = pl.GridSpec(
        grid=(B_pad // TB,),
        in_specs=[
            pl.BlockSpec((TB * S, 1), lambda b: (b, 0)),       # token ids (flat)
            pl.BlockSpec((TB * S, 1), lambda b: (b, 0)),       # segment ids (flat)
            pl.BlockSpec((TB, 1), lambda b: (b, 0)),           # valid_length
            pl.BlockSpec((V_pad, H_pad), lambda b: (0, 0)),    # token table (resident)
            pl.BlockSpec((2, H_pad), lambda b: (0, 0)),        # segment table (resident)
            pl.BlockSpec((H_pad, H_pad), lambda b: (0, 0)),    # pooler weight
            pl.BlockSpec((1, H_pad), lambda b: (0, 0)),        # pooler bias
            pl.BlockSpec((H_pad, C_pad), lambda b: (0, 0)),    # classifier weight [H,C]
            pl.BlockSpec((1, C_pad), lambda b: (0, 0)),        # classifier bias
        ],
        out_specs=pl.BlockSpec((TB, C_pad), lambda b: (b, 0)),
    )

    flops = 2 * B_pad * (S * V_pad * H_pad + H_pad * H_pad + H_pad * C_pad)
    bytes_accessed = ((B_pad * S * 2 + B_pad) * 4
                      + (V_pad * H_pad + 2 * H_pad) * 4
                      + (H_pad * H_pad + H_pad * C_pad) * 2 + (H_pad + C_pad) * 4
                      + B_pad * C_pad * 4)

    logits = pl.pallas_call(
        bert_classifier_kernel,
        out_shape=jax.ShapeDtypeStruct((B_pad, C_pad), jnp.float32),
        grid_spec=grid_spec,
        compiler_params=pltpu.CompilerParams(
            dimension_semantics=("parallel",),     # batch tiles shard across TCs on v7x
            vmem_limit_bytes=32 * 1024 * 1024,     # small footprint; safe on v5e/v6e/v7x
        ),
        cost_estimate=pl.CostEstimate(flops=flops, transcendentals=B_pad * H_pad,
                                      bytes_accessed=bytes_accessed),
    )(tok_flat, seg_flat, vlen_col, tok_tab_p, seg_tab_p,
      w_pool_p, b_pool_p, w_cls_p, b_cls_p)

    return logits[:B, :C]


if __name__ == "__main__":
    # Small shapes consistent with the module: batch=2, seq=8, hidden=32, classes=128.
    B, S, H, C, V = 2, 8, 32, 128, 100

    key = jax.random.PRNGKey(0)
    k1, k2, k3, k4, k5 = jax.random.split(key, 5)

    token_ids = jax.random.randint(k1, (B, S), 0, V, dtype=jnp.int32)
    segment_ids = jnp.zeros((B, S), dtype=jnp.int32)
    valid_length = jnp.array([5, 8], dtype=jnp.int32)

    # Deterministic synthetic parameters (shapes implied by __init__ / forward).
    tok_tab = 0.02 * jax.random.normal(k2, (V, H), jnp.float32)
    seg_tab = 0.02 * jax.random.normal(k3, (2, H), jnp.float32)
    w_pool = jax.random.normal(k4, (H, H), jnp.float32) / jnp.sqrt(H)
    b_pool = jnp.zeros((1, H), jnp.float32)
    w_cls = jax.random.normal(k5, (H, C), jnp.float32) / jnp.sqrt(H)   # Linear(H, C) as [H, C]
    b_cls = jnp.zeros((1, C), jnp.float32)

    params = (tok_tab, seg_tab, w_pool, b_pool, w_cls, b_cls)

    logits = bert_classifier_forward(token_ids, valid_length, segment_ids, params)
    jax.block_until_ready(logits)
    assert logits.shape == (B, C) and logits.dtype == jnp.float32
    assert bool(jnp.all(jnp.isfinite(logits)))
    print("KERNEL_OK")
</pallas_src>

<mosaic_0001>
module attributes {stable_mosaic.version = 11 : i64} {
  func.func @bert_classifier_kernel(%arg0: i32, %arg1: memref<64x1xi32, #tpu.memory_space<vmem>>, %arg2: memref<64x1xi32, #tpu.memory_space<vmem>>, %arg3: memref<8x1xi32, #tpu.memory_space<vmem>>, %arg4: memref<128x128xf32, #tpu.memory_space<vmem>>, %arg5: memref<2x128xf32, #tpu.memory_space<vmem>>, %arg6: memref<128x128xbf16, #tpu.memory_space<vmem>>, %arg7: memref<1x128xf32, #tpu.memory_space<vmem>>, %arg8: memref<128x128xbf16, #tpu.memory_space<vmem>>, %arg9: memref<1x128xf32, #tpu.memory_space<vmem>>, %arg10: memref<8x128xf32, #tpu.memory_space<vmem>>) attributes {dimension_semantics = [#tpu.dimension_semantics<parallel>], iteration_bounds = array<i64: 1>, scalar_prefetch = 0 : i64, scratch_operands = 0 : i64, tpu.core_type = #tpu.core_type<tc>, window_params = [{transform_indices = @transform_0, window_bounds = array<i64: 64, 1>}, {transform_indices = @transform_1, window_bounds = array<i64: 64, 1>}, {transform_indices = @transform_2, window_bounds = array<i64: 8, 1>}, {pipeline_mode = #tpu.pipeline_mode<synchronous>, transform_indices = @transform_3, window_bounds = array<i64: 128, 128>}, {pipeline_mode = #tpu.pipeline_mode<synchronous>, transform_indices = @transform_4, window_bounds = array<i64: 2, 128>}, {pipeline_mode = #tpu.pipeline_mode<synchronous>, transform_indices = @transform_5, window_bounds = array<i64: 128, 128>}, {pipeline_mode = #tpu.pipeline_mode<synchronous>, transform_indices = @transform_6, window_bounds = array<i64: 1, 128>}, {pipeline_mode = #tpu.pipeline_mode<synchronous>, transform_indices = @transform_7, window_bounds = array<i64: 128, 128>}, {pipeline_mode = #tpu.pipeline_mode<synchronous>, transform_indices = @transform_8, window_bounds = array<i64: 1, 128>}, {transform_indices = @transform_9, window_bounds = array<i64: 8, 128>}]} {
    %c0 = arith.constant 0 : index
    %c0_0 = arith.constant 0 : index
    %0 = vector.load %arg1[%c0, %c0_0] : memref<64x1xi32, #tpu.memory_space<vmem>>, vector<64x1xi32>
    %1 = tpu.iota {dimensions = array<i32: 1>} : vector<64x128xi32>
    %2 = vector.broadcast %0 : vector<64x1xi32> to vector<64x128xi32>
    %3 = arith.cmpi eq, %2, %1 : vector<64x128xi32>
    %4 = arith.extui %3 : vector<64x128xi1> to vector<64x128xi32>
    %5 = arith.sitofp %4 : vector<64x128xi32> to vector<64x128xf32>
    %c0_1 = arith.constant 0 : index
    %c0_2 = arith.constant 0 : index
    %6 = vector.load %arg4[%c0_1, %c0_2] : memref<128x128xf32, #tpu.memory_space<vmem>>, vector<128x128xf32>
    %cst = arith.constant dense<0.000000e+00> : vector<64x128xf32>
    %7 = tpu.matmul %5, %6, %cst {dimension_numbers = #tpu.dot_dimension_numbers<[1], [0], [0], [1], [0, 0, 1, 1], [], []>} : vector<64x128xf32>, vector<128x128xf32>, vector<64x128xf32> -> vector<64x128xf32>
    %c0_3 = arith.constant 0 : index
    %c0_4 = arith.constant 0 : index
    %8 = vector.load %arg2[%c0_3, %c0_4] : memref<64x1xi32, #tpu.memory_space<vmem>>, vector<64x1xi32>
    %9 = arith.sitofp %8 : vector<64x1xi32> to vector<64x1xf32>
    %c0_5 = arith.constant 0 : index
    %c0_6 = arith.constant 0 : index
    %10 = vector.load %arg5[%c0_5, %c0_6] : memref<2x128xf32, #tpu.memory_space<vmem>>, vector<2x128xf32>
    %11 = vector.extract_strided_slice %10 {offsets = [0, 0], sizes = [1, 128], strides = [1, 1]} : vector<2x128xf32> to vector<1x128xf32>
    %12 = vector.extract_strided_slice %10 {offsets = [1, 0], sizes = [1, 128], strides = [1, 1]} : vector<2x128xf32> to vector<1x128xf32>
    %cst_7 = arith.constant 1.000000e+00 : f32
    %13 = vector.broadcast %cst_7 : f32 to vector<64x1xf32>
    %14 = arith.subf %13, %9 : vector<64x1xf32>
    %15 = vector.broadcast %14 : vector<64x1xf32> to vector<64x128xf32>
    %16 = vector.broadcast %11 : vector<1x128xf32> to vector<64x128xf32>
    %17 = arith.mulf %15, %16 : vector<64x128xf32>
    %18 = vector.broadcast %9 : vector<64x1xf32> to vector<64x128xf32>
    %19 = vector.broadcast %12 : vector<1x128xf32> to vector<64x128xf32>
    %20 = arith.mulf %18, %19 : vector<64x128xf32>
    %21 = arith.addf %17, %20 : vector<64x128xf32>
    %22 = arith.addf %7, %21 : vector<64x128xf32>
    %23 = vector.shape_cast %22 : vector<64x128xf32> to vector<8x8x128xf32>
    %24 = tpu.iota {dimensions = array<i32: 1>} : vector<8x8x1xi32>
    %c0_8 = arith.constant 0 : index
    %c0_9 = arith.constant 0 : index
    %25 = vector.load %arg3[%c0_8, %c0_9] : memref<8x1xi32, #tpu.memory_space<vmem>>, vector<8x1xi32>
    %26 = vector.shape_cast %25 : vector<8x1xi32> to vector<8x1x1xi32>
    %27 = vector.broadcast %26 : vector<8x1x1xi32> to vector<8x8x1xi32>
    %28 = arith.cmpi slt, %24, %27 : vector<8x8x1xi32>
    %29 = arith.extui %28 : vector<8x8x1xi1> to vector<8x8x1xi32>
    %30 = arith.sitofp %29 : vector<8x8x1xi32> to vector<8x8x1xf32>
    %cst_10 = arith.constant dense<0.000000e+00> : vector<8x1xf32>
    %31 = vector.multi_reduction <add>, %30, %cst_10 [1] : vector<8x8x1xf32> to vector<8x1xf32>
    %32 = vector.broadcast %30 : vector<8x8x1xf32> to vector<8x8x128xf32>
    %33 = arith.mulf %23, %32 : vector<8x8x128xf32>
    %cst_11 = arith.constant dense<0.000000e+00> : vector<8x128xf32>
    %34 = vector.multi_reduction <add>, %33, %cst_11 [1] : vector<8x8x128xf32> to vector<8x128xf32>
    %cst_12 = arith.constant 1.000000e+00 : f32
    %35 = vector.broadcast %cst_12 : f32 to vector<8x1xf32>
    %36 = arith.maximumf %31, %35 : vector<8x1xf32>
    %37 = tpu.reciprocal %36 {approx = true} : vector<8x1xf32> -> vector<8x1xf32>
    %38 = vector.broadcast %37 : vector<8x1xf32> to vector<8x128xf32>
    %39 = arith.mulf %34, %38 : vector<8x128xf32>
    %40 = arith.truncf %39 : vector<8x128xf32> to vector<8x128xbf16>
    %c0_13 = arith.constant 0 : index
    %c0_14 = arith.constant 0 : index
    %41 = vector.load %arg6[%c0_13, %c0_14] : memref<128x128xbf16, #tpu.memory_space<vmem>>, vector<128x128xbf16>
    %cst_15 = arith.constant dense<0.000000e+00> : vector<8x128xf32>
    %42 = tpu.matmul %40, %41, %cst_15 {dimension_numbers = #tpu.dot_dimension_numbers<[1], [0], [0], [1], [0, 0, 1, 1], [], []>} : vector<8x128xbf16>, vector<128x128xbf16>, vector<8x128xf32> -> vector<8x128xf32>
    %c0_16 = arith.constant 0 : index
    %c0_17 = arith.constant 0 : index
    %43 = vector.load %arg7[%c0_16, %c0_17] : memref<1x128xf32, #tpu.memory_space<vmem>>, vector<1x128xf32>
    %44 = vector.broadcast %43 : vector<1x128xf32> to vector<8x128xf32>
    %45 = arith.addf %42, %44 : vector<8x128xf32>
    %46 = math.tanh %45 : vector<8x128xf32>
    %47 = arith.truncf %46 : vector<8x128xf32> to vector<8x128xbf16>
    %c0_18 = arith.constant 0 : index
    %c0_19 = arith.constant 0 : index
    %48 = vector.load %arg8[%c0_18, %c0_19] : memref<128x128xbf16, #tpu.memory_space<vmem>>, vector<128x128xbf16>
    %cst_20 = arith.constant dense<0.000000e+00> : vector<8x128xf32>
    %49 = tpu.matmul %47, %48, %cst_20 {dimension_numbers = #tpu.dot_dimension_numbers<[1], [0], [0], [1], [0, 0, 1, 1], [], []>} : vector<8x128xbf16>, vector<128x128xbf16>, vector<8x128xf32> -> vector<8x128xf32>
    %c0_21 = arith.constant 0 : index
    %c0_22 = arith.constant 0 : index
    %50 = vector.load %arg9[%c0_21, %c0_22] : memref<1x128xf32, #tpu.memory_space<vmem>>, vector<1x128xf32>
    %51 = vector.broadcast %50 : vector<1x128xf32> to vector<8x128xf32>
    %52 = arith.addf %49, %51 : vector<8x128xf32>
    %c0_23 = arith.constant 0 : index
    %c0_24 = arith.constant 0 : index
    %53 = vector.load %arg10[%c0_23, %c0_24] : memref<8x128xf32, #tpu.memory_space<vmem>>, vector<8x128xf32>
    tpu.vector_store %arg10[%c0_23, %c0_24], %52 {strides = array<i32>} : memref<8x128xf32, #tpu.memory_space<vmem>>, vector<8x128xf32>,
    return
  }
  func.func @transform_0(%arg0: i32) -> (i32, i32) {
    %c0_i32 = arith.constant 0 : i32
    %c0_i32_0 = arith.constant 0 : i32
    return %arg0, %c0_i32 : i32, i32
  }
  func.func @transform_1(%arg0: i32) -> (i32, i32) {
    %c0_i32 = arith.constant 0 : i32
    %c0_i32_0 = arith.constant 0 : i32
    return %arg0, %c0_i32 : i32, i32
  }
  func.func @transform_2(%arg0: i32) -> (i32, i32) {
    %c0_i32 = arith.constant 0 : i32
    %c0_i32_0 = arith.constant 0 : i32
    return %arg0, %c0_i32 : i32, i32
  }
  func.func @transform_3(%arg0: i32) -> (i32, i32) {
    %c0_i32 = arith.constant 0 : i32
    %c0_i32_0 = arith.constant 0 : i32
    %c0_i32_1 = arith.constant 0 : i32
    return %c0_i32, %c0_i32_0 : i32, i32
  }
  func.func @transform_4(%arg0: i32) -> (i32, i32) {
    %c0_i32 = arith.constant 0 : i32
    %c0_i32_0 = arith.constant 0 : i32
    %c0_i32_1 = arith.constant 0 : i32
    return %c0_i32, %c0_i32_0 : i32, i32
  }
  func.func @transform_5(%arg0: i32) -> (i32, i32) {
    %c0_i32 = arith.constant 0 : i32
    %c0_i32_0 = arith.constant 0 : i32
    %c0_i32_1 = arith.constant 0 : i32
    return %c0_i32, %c0_i32_0 : i32, i32
  }
  func.func @transform_6(%arg0: i32) -> (i32, i32) {
    %c0_i32 = arith.constant 0 : i32
    %c0_i32_0 = arith.constant 0 : i32
    %c0_i32_1 = arith.constant 0 : i32
    return %c0_i32, %c0_i32_0 : i32, i32
  }
  func.func @transform_7(%arg0: i32) -> (i32, i32) {
    %c0_i32 = arith.constant 0 : i32
    %c0_i32_0 = arith.constant 0 : i32
    %c0_i32_1 = arith.constant 0 : i32
    return %c0_i32, %c0_i32_0 : i32, i32
  }
  func.func @transform_8(%arg0: i32) -> (i32, i32) {
    %c0_i32 = arith.constant 0 : i32
    %c0_i32_0 = arith.constant 0 : i32
    %c0_i32_1 = arith.constant 0 : i32
    return %c0_i32, %c0_i32_0 : i32, i32
  }
  func.func @transform_9(%arg0: i32) -> (i32, i32) {
    %c0_i32 = arith.constant 0 : i32
    %c0_i32_0 = arith.constant 0 : i32
    return %arg0, %c0_i32 : i32, i32
  }
}

</mosaic_0001>

<bundles_post_ra>
// kernel: tpu_custom_call.1
= control target key start
LH: loop header
LB: loop body
LE: loop exit
PB: predicated region body
PF: predicated region fallthrough
CT: control target
= control target key end

     0   :  { %14 = vsyncpa [#allocation3], 0  ;;  %s1687_s0 = inlined_call_operand.vmem [shape: s32[64,1], index: 0, kind: input, shape index: {}]   ;;  %s1688_s1 = inlined_call_operand.vmem [shape: s32[64,1], index: 1, kind: input, shape index: {}]   ;;  %s1689_s2 = inlined_call_operand.vmem [shape: s32[8,1], index: 2, kind: input, shape index: {}]   ;;  %s1690_s3 = inlined_call_operand.vmem [shape: f32[128,128], index: 3, kind: input, shape index: {}]   ;;  %s1691_s4 = inlined_call_operand.vmem [shape: f32[2,128], index: 4, kind: input, shape index: {}]   ;;  %s1692_s5 = inlined_call_operand.hbm [shape: bf16[128,128], index: 5, kind: input, shape index: {}]   ;;  %s1693_s6 = inlined_call_operand.vmem [shape: f32[1,128], index: 6, kind: input, shape index: {}]   ;;  %s1694_s7 = inlined_call_operand.hbm [shape: bf16[128,128], index: 7, kind: input, shape index: {}]   ;;  %s1695_s8 = inlined_call_operand.vmem [shape: f32[1,128], index: 8, kind: input, shape index: {}]   ;;  %s1696_s9 = inlined_call_operand.hbm [shape: f32[8,128], index: 9, kind: output, shape index: {}]  }
   0x1   :  { %15 = vsyncpa [#allocation6], 0 }
   0x2   :  { %16 = vsyncpa [#allocation4], 0  ;;  %s1323_s30 = smov [#allocation2]   ;;  %s1251_s13 = scalar_lea.hbm %s1692_s5, 1024 }
   0x3   :  { %s32_s10 = sshll.u32 %s1323_s30, 4  ;;  %p1252_p0 = scmp.ne.s32.totalorder %s1692_s5, %s1251_s13  ;;  %s33_s10 = int_to_ptr.vmem [resolvable:$true] %s32_s10 }
   0x4   :  { %p1255_p1 = scmp.lt.u32.totalorder %s1251_s13, %s1692_s5 }
   0x6   :  { %p1257_p2 = pnand %p1255_p1, %p1252_p0 }
   0x8   :  { %1260 = shalt.err (!%p1257_p2)
}
   0x9   :  { %s1261_s18 = scalar_lea.vmem %s33_s10, 1024  ;;  %p1266_p4 = scmp.lt.s32.totalorder %s33_s10, %s33_s10 }
   0xa   :  { %p1262_p3 = scmp.ne.s32.totalorder %s33_s10, %s1261_s18  ;;  %p1267_p5 = scmp.lt.s32.totalorder %s1261_s18, %s1261_s18 }
   0xc   :  { %p1268_p6 = por %p1267_p5, %p1266_p4 }
   0xe   :  { %p1269_p7 = pnand %p1268_p6, %p1262_p3 }
  0x10   :  { %1272 = shalt.err (!%p1269_p7)
}
  0x11   :  { %s1324_s19 = smov 64   ;;  %s1325_s20 = smov 4  }
  0x12   :  { %38 = dma.hbm_to_vmem [thread:$0]  %s1692_s5, 1024, %s33_s10, [#allocation3], %s1324_s19, %s1324_s19, %s1325_s20  }
  0x13   :  { %s1326_s23 = smov [#allocation5]   ;;  %s1273_s27 = scalar_lea.hbm %s1694_s7, 1024 }
  0x14   :  { %s46_s24 = sshll.u32 %s1326_s23, 4  ;;  %p1274_p8 = scmp.ne.s32.totalorder %s1694_s7, %s1273_s27  ;;  %s47_s24 = int_to_ptr.vmem [resolvable:$true] %s46_s24 }
  0x15   :  { %p1277_p9 = scmp.lt.u32.totalorder %s1273_s27, %s1694_s7 }
  0x17   :  { %p1279_p10 = pnand %p1277_p9, %p1274_p8 }
  0x19   :  { %1282 = shalt.err (!%p1279_p10)
}
  0x1a   :  { %s1283_s12 = scalar_lea.vmem %s47_s24, 1024  ;;  %p1288_p12 = scmp.lt.s32.totalorder %s47_s24, %s47_s24 }
  0x1b   :  { %p1284_p11 = scmp.ne.s32.totalorder %s47_s24, %s1283_s12  ;;  %p1289_p13 = scmp.lt.s32.totalorder %s1283_s12, %s1283_s12 }
  0x1d   :  { %p1290_p0 = por %p1289_p13, %p1288_p12 }
  0x1f   :  { %p1291_p1 = pnand %p1290_p0, %p1284_p11 }
  0x21   :  { %1294 = shalt.err (!%p1291_p1)
}
  0x22   :  { %52 = dma.hbm_to_vmem [thread:$0]  %s1694_s7, 1024, %s47_s24, [#allocation6], %s1324_s19, %s1324_s19, %s1325_s20  }
  0x23   :  { %1317 = dma.done.wait [#allocation3], 1024  }
  0x24   :  { %1318 = vsyncadd [#allocation3], 4294966272 }
  0x25   :  { %1319 = dma.done.wait [#allocation6], 1024  }
  0x26   :  { %1320 = vsyncadd [#allocation6], 4294966272  ;;  %v1327_v0 = vmov 0   ;;  %v70_v1 = vlaneseq  ;;  %v1328_v2 = vmov 1966171168   ;;  %v1329_v4 = vmov 0.0  }
  0x27   :  { %1195 = vset.pattern.permute.xlu1 %v1327_v0  ;;  %1194 = vset.pattern.permute.xlu0 %v1327_v0  ;;  %v383_v3 = vunpack.c.l.s4 %v1328_v2  ;;  %v64_v7 = vld [vmem:[%s1687_s0 + $0x10] sm:$0xff]  ;;  %v62_v8 = vld [vmem:[%s1687_s0] sm:$0xff]  ;;  %v65_v9 = vld [vmem:[%s1687_s0 + $0x18] sm:$0xff]  ;;  %vm486_vm0 = vcmask 7168   ;;  %s1332_s11 = smov [#allocation7]  }
  0x28   :  { %1112 = vmatprep.subr.bf16.mxu1 %v1329_v4  ;;  %v1409_v5 = vshrl.u32 %v70_v1, 7  ;;  %79 = vperm.xlu1 %1195, %v64_v7   ;;  %v63_v10 = vld [vmem:[%s1687_s0 + $0x8] sm:$0xff]  ;;  %v1431_v12 = vld [vmem:[%s1688_s1] sm:$0xff]  ;;  %v1436_v13 = vld [vmem:[%s1688_s1 + $0x10] sm:$0xff]  ;;  %s974_s12 = sshll.u32 %s1332_s11, 4  ;;  %s975_s12 = int_to_ptr.vmem [resolvable:$true] %s974_s12 }
  0x29   :  { %v384_v6 = vunpack.c.0.s8 %v383_v3  ;;  %73 = vperm.xlu0 %1194, %v62_v8   ;;  %v1426_v11 = vld [vmem:[%s1688_s1 + $0x8] sm:$0xff]  ;;  %v66_v16 = vld [vmem:[%s1687_s0 + $0x20] sm:$0xff]  ;;  %v144_v20 = vcvt.s32.f32 %v1431_v12  ;;  %v146_v21 = vcvt.s32.f32 %v1436_v13  ;;  %v122_v23 = vld [vmem:[%s1690_s3 + $0x10] sm:$0xff]  ;;  %p1300_p3 = scmp.lt.s32.totalorder %s975_s12, %s975_s12 }
  0x2a   :  { %v67_v15 = vld [vmem:[%s1687_s0 + $0x28] sm:$0xff]  ;;  %v380_v17 = vld [vmem:[%s1689_s2] sm:$0xff]  ;;  %v145_v19 = vcvt.s32.f32 %v1426_v11  ;;  %v123_v24 = vld [vmem:[%s1690_s3 + $0x18] sm:$0xff]  ;;  %v1464_v25 = vsub.s32 0, %v1409_v5 }
  0x2b   :  { %v387_v14 = vsub.s32 %v384_v6, %v1409_v5  ;;  %v120_v18 = vld [vmem:[%s1690_s3] sm:$0xff]  ;;  %v121_v22 = vld [vmem:[%s1690_s3 + $0x8] sm:$0xff]  ;;  %v381_v27 = vcombine.high %v380_v17, %v380_v17  ;;  %v1156_v29 = vpack.c.bf16 %v123_v24, %v122_v23  ;;  %v69_v30 = vld [vmem:[%s1687_s0 + $0x38] sm:$0xff]  ;;  %v153_v37 = vsub.f32 1.0, %v144_v20 }
  0x2c   :  { %82 = vperm.xlu1 %1195, %v65_v9   ;;  %v1152_v28 = vpack.c.bf16 %v121_v22, %v120_v18  ;;  %v124_v33 = vld [vmem:[%s1690_s3 + $0x20] sm:$0xff]  ;;  %v125_v34 = vld [vmem:[%s1690_s3 + $0x28] sm:$0xff]  ;;  %v68_v35 = vld [vmem:[%s1687_s0 + $0x30] sm:$0xff]  ;;  %v154_v36 = vsub.f32 1.0, %v145_v19  ;;  %v1484_v38 = vsub.f32 1.0, %v146_v21 }
  0x2d   :  { %76 = vperm.xlu0 %1194, %v63_v10   ;;  %v388_v26 = vrot.slane %v380_v17, %v387_v14  ;;  %v395_v39 = vrot.slane %v381_v27, %v387_v14  ;;  %v126_v40 = vld [vmem:[%s1690_s3 + $0x30] sm:$0xff]  ;;  %v127_v41 = vld [vmem:[%s1690_s3 + $0x38] sm:$0xff]  ;;  %v1160_v47 = vpack.c.bf16 %v125_v34, %v124_v33  ;;  %v128_v57 = vld [vmem:[%s1690_s3 + $0x40] sm:$0xff] }
  0x2e   :  { %1153 = vmatprep.subr.bf16.mxu0 %v1152_v28  ;;  %v1500_v51 = vld [vmem:[%s1688_s1 + $0x18] sm:$0xff]  ;;  %v1164_v54 = vpack.c.bf16 %v127_v41, %v126_v40  ;;  %v129_v62 = vld [vmem:[%s1690_s3 + $0x48] sm:$0xff]  ;;  %v130_v18 = vld [vmem:[%s1690_s3 + $0x50] sm:$0xff] }
  0x2f   :  { %v396_v31 = vcombine.high %v388_v26, %v388_v26  ;;  %v404_v32 = vrot.slane %v388_v26, %v387_v14  ;;  %1155 = vmatpush3.bf16.msra.mxu0 %v1152_v28  ;;  %v397_v45 = vcombine.high %v395_v39, %v395_v39  ;;  %v1493_v46 = vrot.slane %v395_v39, %v387_v14  ;;  %v131_v24 = vld [vmem:[%s1690_s3 + $0x58] sm:$0xff]  ;;  %v140_v27 = vld [vmem:[%s1688_s1 + $0x20] sm:$0xff]  ;;  %v134_v41 = vld [vmem:[%s1690_s3 + $0x70] sm:$0xff] }
  0x30   :  { %88 = vperm.xlu1 %1195, %v67_v15   ;;  %1157 = vmatprep.subr.bf16.mxu0 %v1156_v29  ;;  %v147_v63 = vcvt.s32.f32 %v1500_v51  ;;  %v1168_v17 = vpack.c.bf16 %v129_v62, %v128_v57  ;;  %v1172_v33 = vpack.c.bf16 %v131_v24, %v130_v18  ;;  %v148_v34 = vcvt.s32.f32 %v140_v27 }
  0x31   :  { %85 = vperm.xlu0 %1194, %v66_v16   ;;  %v418_v42 = vrot.slane %v396_v31, %v387_v14  ;;  %v426_v43 = vcombine.high %v404_v32, %v404_v32  ;;  %v433_v44 = vrot.slane %v404_v32, %v1464_v25  ;;  %v1503_v52 = vrot.slane %v397_v45, %v387_v14 }
  0x32   :  { %v427_v53 = vcombine.high %v1493_v46, %v1493_v46  ;;  %v156_v26 = vsub.f32 1.0, %v147_v63  ;;  %v449_v11 = vrot.slane %v1493_v46, %v1464_v25 }
  0x33   :  { %v428_v48 = vcombine.high %v418_v42, %v418_v42  ;;  %v441_v49 = vrot.slane %v426_v43, %v1464_v25  ;;  %v437_v50 = vrot.slane %v418_v42, %v1464_v25  ;;  %vm462_vm1 = vcmp.lt.s32.totalorder %v1409_v5, %v433_v44  ;;  %1159 = vmatpush3.bf16.msra.mxu0 %v1156_v29  ;;  %v135_v42 = vld [vmem:[%s1690_s3 + $0x78] sm:$0xff] }
  0x34   :  { %94 = vperm.xlu1 %1195, %v69_v30   ;;  %v1511_v56 = vsel %vm462_vm1, 1.0, %v1329_v4  ;;  %v429_v61 = vcombine.high %v1503_v52, %v1503_v52  ;;  %1161 = vmatprep.subr.bf16.mxu0 %v1160_v47  ;;  %v457_v8 = vrot.slane %v427_v53, %v1464_v25  ;;  %v453_v12 = vrot.slane %v1503_v52, %v1464_v25  ;;  %v132_v30 = vld [vmem:[%s1690_s3 + $0x60] sm:$0xff] }
  0x35   :  { %91 = vperm.xlu0 %1194, %v68_v35   ;;  %v445_v55 = vrot.slane %v428_v48, %v1464_v25  ;;  %vm464_vm2 = vcmp.lt.s32.totalorder %v1409_v5, %v441_v49  ;;  %vm463_vm3 = vcmp.lt.s32.totalorder %v1409_v5, %v437_v50  ;;  %v487_v60 = vsel %vm486_vm0, %v1511_v56, 0.0  ;;  %v142_v50 = vld [vmem:[%s1688_s1 + $0x30] sm:$0xff] }
  0x36   :  { %v1517_v58 = vsel %vm464_vm2, 1.0, %v1329_v4  ;;  %v1520_v59 = vsel %vm463_vm3, 1.0, %v1329_v4  ;;  %v488_v2 = vrot.slane %v487_v60, 4  ;;  %v461_v16 = vrot.slane %v429_v61, %v1464_v25 }
  0x37   :  { %vm465_vm4 = vcmp.lt.s32.totalorder %v1409_v5, %v445_v55  ;;  %v501_v0 = vsel %vm486_vm0, %v1517_v58, 0.0  ;;  %v494_v7 = vsel %vm486_vm0, %v1520_v59, 0.0  ;;  %1163 = vmatpush3.bf16.msra.mxu0 %v1160_v47  ;;  %vm468_vm5 = vcmp.lt.s32.totalorder %v1409_v5, %v457_v8 }
  0x38   :  { %168 = vperm.xlu1 %1195, %v154_v36   ;;  %v1534_v3 = vsel %vm465_vm4, 1.0, %v1329_v4  ;;  %v502_v6 = vrot.slane %v501_v0, 4  ;;  %v489_v10 = vadd.f32 %v488_v2, %v487_v60  ;;  %v495_v14 = vrot.slane %v494_v7, 4  ;;  %1165 = vmatprep.subr.bf16.mxu0 %v1164_v54  ;;  %v133_v36 = vld [vmem:[%s1690_s3 + $0x68] sm:$0xff] }
  0x39   :  { %163 = vperm.xlu0 %1194, %v153_v37   ;;  %v508_v9 = vsel %vm486_vm0, %v1534_v3, 0.0  ;;  %v1551_v23 = vsel %vm468_vm5, 1.0, %v1329_v4  ;;  %vm469_vm6 = vcmp.lt.s32.totalorder %v1409_v5, %v461_v16  ;;  %v141_v37 = vld [vmem:[%s1688_s1 + $0x28] sm:$0xff]  ;;  %vm466_vm7 = vcmp.lt.s32.totalorder %v1409_v5, %v449_v11 }
  0x3a   :  { %v509_v15 = vrot.slane %v508_v9, 4  ;;  %v496_v22 = vadd.f32 %v495_v14, %v494_v7  ;;  %v490_v28 = vrot.slane %v489_v10, 2  ;;  %v1565_v29 = vsel %vm469_vm6, 1.0, %v1329_v4  ;;  %v143_v7 = vld [vmem:[%s1688_s1 + $0x38] sm:$0xff] }
  0x3b   :  { %1167 = vmatpush3.bf16.msra.mxu0 %v1164_v54  ;;  %v529_v32 = vsel %vm486_vm0, %v1551_v23, 0.0  ;;  %v536_v35 = vsel %vm486_vm0, %v1565_v29, 0.0  ;;  %vm1585_vm8 = vcmp.lt.s32.totalorder %v1409_v5, %v453_v12  ;;  %v1596_v45 = vsel %vm466_vm7, 1.0, %v1329_v4 }
  0x3c   :  { %220 = vperm.xlu1 %1195, %v145_v19   ;;  %v503_v19 = vadd.f32 %v502_v6, %v501_v0  ;;  %v497_v31 = vrot.slane %v496_v22, 2  ;;  %1169 = vmatprep.subr.bf16.mxu0 %v1168_v17  ;;  %v491_v39 = vadd.f32 %v490_v28, %v489_v10  ;;  %v530_v40 = vrot.slane %v529_v32, 4 }
  0x3d   :  { %215 = vperm.xlu0 %1194, %v144_v20   ;;  %v510_v20 = vadd.f32 %v509_v15, %v508_v9  ;;  %v537_v44 = vrot.slane %v536_v35, 4  ;;  %v1176_v46 = vpack.c.bf16 %v133_v36, %v132_v30  ;;  %v157_v47 = vsub.f32 1.0, %v148_v34 }
  0x3e   :  { %v498_v43 = vadd.f32 %v497_v31, %v496_v22  ;;  %v149_v48 = vcvt.s32.f32 %v141_v37  ;;  %v1601_v49 = vsel %vm1585_vm8, 1.0, %v1329_v4  ;;  %v515_v51 = vsel %vm486_vm0, %v1596_v45, 0.0 }
  0x3f   :  { %1171 = vmatpush3.bf16.msra.mxu0 %v1168_v17  ;;  %v1180_v52 = vpack.c.bf16 %v135_v42, %v134_v41  ;;  %v492_v55 = vrot.slane %v491_v39, 1  ;;  %v531_v57 = vadd.f32 %v530_v40, %v529_v32  ;;  %v538_v61 = vadd.f32 %v537_v44, %v536_v35 }
  0x40   :  { %225 = vperm.xlu1 %1195, %v146_v21   ;;  %v504_v21 = vrot.slane %v503_v19, 2  ;;  %1173 = vmatprep.subr.bf16.mxu0 %v1172_v33  ;;  %v499_v60 = vrot.slane %v498_v43, 1  ;;  %v516_v62 = vrot.slane %v515_v51, 4  ;;  %v158_v0 = vsub.f32 1.0, %v149_v48 }
  0x41   :  { %173 = vperm.xlu0 %1194, %v1484_v38   ;;  %v511_v38 = vrot.slane %v510_v20, 2  ;;  %v150_v2 = vcvt.s32.f32 %v142_v50  ;;  %v493_v10 = vadd.f32 %v492_v55, %v491_v39  ;;  %v532_v14 = vrot.slane %v531_v57, 2 }
  0x42   :  { %v505_v53 = vadd.f32 %v504_v21, %v503_v19  ;;  %v517_v8 = vadd.f32 %v516_v62, %v515_v51  ;;  %v500_v17 = vadd.f32 %v499_v60, %v498_v43  ;;  %v539_v18 = vrot.slane %v538_v61, 2 }
  0x43   :  { %v512_v54 = vadd.f32 %v511_v38, %v510_v20  ;;  %1175 = vmatpush3.bf16.msra.mxu0 %v1172_v33  ;;  %v159_v24 = vsub.f32 1.0, %v150_v2  ;;  %v639_v19 = vmax.f32 %v493_v10, 1.0  ;;  %v533_v20 = vadd.f32 %v532_v14, %v531_v57 }
  0x44   :  { %230 = vperm.xlu1 %1195, %v147_v63   ;;  %v522_v63 = vsel %vm486_vm0, %v1601_v49, 0.0  ;;  %1177 = vmatprep.subr.bf16.mxu0 %v1176_v46  ;;  %v506_v9 = vrot.slane %v505_v53, 1  ;;  %v518_v22 = vrot.slane %v517_v8, 2  ;;  %v640_v31 = vmax.f32 %v500_v17, 1.0 }
  0x45   :  { %178 = vperm.xlu0 %1194, %v156_v26   ;;  %v523_v6 = vrot.slane %v522_v63, 4  ;;  %v513_v16 = vrot.slane %v512_v54, 1  ;;  %v151_v26 = vcvt.s32.f32 %v143_v7  ;;  %v540_v32 = vadd.f32 %v539_v18, %v538_v61 }
  0x46   :  { %v519_v11 = vadd.f32 %v518_v22, %v517_v8  ;;  %v507_v12 = vadd.f32 %v506_v9, %v505_v53  ;;  %1233 = vrcp.f32 %v639_v19  ;;  %v534_v37 = vrot.slane %v533_v20, 1 }
  0x47   :  { %v524_v15 = vadd.f32 %v523_v6, %v522_v63  ;;  %1179 = vmatpush3.bf16.msra.mxu0 %v1176_v46  ;;  %v514_v30 = vadd.f32 %v513_v16, %v512_v54  ;;  %1235 = vrcp.f32 %v640_v31  ;;  %v541_v38 = vrot.slane %v540_v32, 1 }
  0x48   :  { %235 = vperm.xlu1 %1195, %v148_v34   ;;  %1181 = vmatprep.subr.bf16.mxu0 %v1180_v52  ;;  %v520_v33 = vrot.slane %v519_v11, 1  ;;  %v160_v34 = vsub.f32 1.0, %v151_v26  ;;  %v641_v36 = vmax.f32 %v507_v12, 1.0  ;;  %v1201_v40 = vpack.i.bf16 %v1534_v3, %v1517_v58 }
  0x49   :  { %183 = vperm.xlu0 %1194, %v157_v47   ;;  %v525_v27 = vrot.slane %v524_v15, 2  ;;  %v642_v21 = vmax.f32 %v514_v30, 1.0  ;;  %v1196_v41 = vpack.i.bf16 %v1520_v59, %v1511_v56  ;;  %v535_v42 = vadd.f32 %v534_v37, %v533_v20 }
  0x4a   :  { %v521_v13 = vadd.f32 %v520_v33, %v519_v11  ;;  %1237 = vrcp.f32 %v641_v36  ;;  %v542_v44 = vadd.f32 %v541_v38, %v540_v32  ;;  %v1211_v47 = vpack.i.bf16 %v1565_v29, %v1551_v23 }
  0x4b   :  { %v526_v28 = vadd.f32 %v525_v27, %v524_v15  ;;  %1183 = vmatpush3.bf16.msra.mxu0 %v1180_v52  ;;  %1239 = vrcp.f32 %v642_v21  ;;  %v645_v50 = vmax.f32 %v535_v42, 1.0  ;;  %v1330_v55 = vmov 1.0  }
  0x4c   :  { %240 = vperm.xlu1 %1195, %v149_v48   ;;  %1132 = vmatprep.subr.bf16.mxu0 %v1329_v4  ;;  %v643_v43 = vmax.f32 %v521_v13, 1.0  ;;  %v1206_v48 = vpack.i.bf16 %v1601_v49, %v1596_v45  ;;  %v646_v58 = vmax.f32 %v542_v44, 1.0  ;;  %v71_v49 = vand.u32 127, %v70_v1 }
  0x4d   :  { %188 = vperm.xlu0 %1194, %v158_v0   ;;  %v527_v35 = vrot.slane %v526_v28, 1  ;;  %v255_v1 = vsub.s32 1, %v1409_v5  ;;  %vm1331_vm1 = vmmov 0   ;;  %vm750_vm2 = vcmask 1041409  }
  0x4e   :  { %1241 = vrcp.f32 %v643_v43  ;;  %1128 = vmatprep.mubr.msk.bf16.mxu1 %vm1331_vm1, %v1329_v4  ;;  %vm752_vm3 = vcmask 1042434   ;;  %vm754_vm4 = vcmask 1043459   ;;  %vm756_vm5 = vcmask 1044484  }
  0x4f   :  { %v528_v39 = vadd.f32 %v527_v35, %v526_v28  ;;  %vm758_vm6 = vcmask 1045509   ;;  %vm760_vm7 = vcmask 1046534   ;;  %vm762_vm8 = vcmask 1047559  }
  0x50   :  { %245 = vperm.xlu1 %1195, %v150_v2   ;;  %v1234_v3 = vpop.eup %1233  ;;  %v152_v2 = vld [vmem:[%s1691_s4] sm:$0x3] }
  0x51   :  { %193 = vperm.xlu0 %1194, %v159_v24   ;;  %v644_v46 = vmax.f32 %v528_v39, 1.0  ;;  %v1236_v56 = vpop.eup %1235  ;;  %v204_v8 = vrot.slane %v152_v2, %v1464_v25  ;;  %v256_v9 = vrot.slane %v152_v2, %v255_v1 }
  0x53   :  { %1243 = vrcp.f32 %v644_v46 }
  0x54   :  { %250 = vperm.xlu1 %1195, %v151_v26   ;;  %1245 = vrcp.f32 %v645_v50  ;;  %v1238_v59 = vpop.eup %1237 }
  0x55   :  { %198 = vperm.xlu0 %1194, %v160_v34   ;;  %1247 = vrcp.f32 %v646_v58  ;;  %v1240_v51 = vpop.eup %1239  ;;  %v1217_v58 = vld [vmem:[#allocation2] sm:$0xff]  }
  0x56   :  { %1113 = vmatpush3.bf16.msra.mxu1 %v1217_v58 }
  0x57   :  { %1114 = vmatprep.subr.bf16.mxu1 %v1329_v4 }
  0x58   :  { %1202 = vperm.xlu1 %1195, %v1201_v40   ;;  %v1242_v52 = vpop.eup %1241 }
  0x59   :  { %1197 = vperm.xlu0 %1194, %v1196_v41  }
  0x5c   :  { %1212 = vperm.xlu1 %1195, %v1211_v47  }
  0x5d   :  { %1207 = vperm.xlu0 %1194, %v1206_v48   ;;  %v1244_v23 = vpop.eup %1243 }
  0x5e   :  { %v1246_v29 = vpop.eup %1245 }
  0x5f   :  { %v1248_v45 = vpop.eup %1247 }
  0x60   :  { %662 = vperm.xlu1 %1195, %v1236_v56   ;;  %v1219_v56 = vld [vmem:[#allocation2 + $0x10] sm:$0xff]  }
  0x61   :  { %657 = vperm.xlu0 %1194, %v1234_v3   ;;  %v1218_v3 = vld [vmem:[#allocation2 + $0x8] sm:$0xff]  }
  0x62   :  { %1115 = vmatpush3.bf16.msra.mxu1 %v1218_v3 }
  0x63   :  { %1116 = vmatprep.subr.bf16.mxu1 %v1329_v4 }
  0x64   :  { %672 = vperm.xlu1 %1195, %v1240_v51   ;;  %v1221_v51 = vld [vmem:[#allocation2 + $0x20] sm:$0xff]  }
  0x65   :  { %667 = vperm.xlu0 %1194, %v1238_v59   ;;  %v1220_v59 = vld [vmem:[#allocation2 + $0x18] sm:$0xff]  }
  0x66   :  { %1117 = vmatpush3.bf16.msra.mxu1 %v1219_v56 }
  0x67   :  { %1118 = vmatprep.subr.bf16.mxu1 %v1329_v4 }
  0x68   :  { %682 = vperm.xlu1 %1195, %v1244_v23   ;;  %v1223_v23 = vld [vmem:[#allocation2 + $0x30] sm:$0xff]  }
  0x69   :  { %677 = vperm.xlu0 %1194, %v1242_v52   ;;  %v1222_v52 = vld [vmem:[#allocation2 + $0x28] sm:$0xff]  }
  0x6a   :  { %1119 = vmatpush3.bf16.msra.mxu1 %v1220_v59 }
  0x6b   :  { %1120 = vmatprep.subr.bf16.mxu1 %v1329_v4 }
  0x6c   :  { %692 = vperm.xlu1 %1195, %v1248_v45   ;;  %v1225_v45 = vld [vmem:[#allocation5] sm:$0xff]  }
  0x6d   :  { %687 = vperm.xlu0 %1194, %v1246_v29   ;;  %v1224_v29 = vld [vmem:[#allocation2 + $0x38] sm:$0xff]  }
  0x6e   :  { %1121 = vmatpush3.bf16.msra.mxu1 %v1221_v51 }
  0x6f   :  { %1122 = vmatprep.subr.bf16.mxu1 %v1329_v4 }
  0x72   :  { %1123 = vmatpush3.bf16.msra.mxu1 %v1222_v52 }
  0x73   :  { %1124 = vmatprep.subr.bf16.mxu1 %v1329_v4 }
  0x76   :  { %1125 = vmatpush3.bf16.msra.mxu1 %v1223_v23 }
  0x77   :  { %1126 = vmatprep.subr.bf16.mxu1 %v1329_v4 }
  0x7a   :  { %1127 = vmatpush3.bf16.msra.mxu1 %v1224_v29 }
  0xa7   :  { %v80_v53 = vpop.permute.xlu1 %79 }
  0xa8   :  { %v74_v54 = vpop.permute.xlu0 %73  ;;  %vm98_vm10 = vcmp.eq.s32.totalorder %v80_v53, %v71_v49  ;;  %v1227_v53 = vld [vmem:[#allocation5 + $0x10] sm:$0xff]  }
  0xa9   :  { %vm96_vm9 = vcmp.eq.s32.totalorder %v74_v54, %v71_v49  ;;  %v1228_v54 = vld [vmem:[#allocation5 + $0x18] sm:$0xff]  }
  0xaa   :  { %1100 = vmatprep.mubr.msk.f32.mxu0 %vm96_vm9, %v1330_v55 }
  0xab   :  { %v83_v57 = vpop.permute.xlu1 %82 }
  0xac   :  { %v77_v60 = vpop.permute.xlu0 %76  ;;  %vm99_vm12 = vcmp.eq.s32.totalorder %v83_v57, %v71_v49 }
  0xad   :  { %vm97_vm11 = vcmp.eq.s32.totalorder %v77_v60, %v71_v49 }
  0xae   :  { %1101 = vmatmul.mubr.msk.f32.vlgmr.msra.gmra.mrb[0].mxu0 %vm97_vm11, %v1330_v55 }
  0xaf   :  { %1103 = vmatprep.mubr.msk.f32.mxu0 %vm98_vm10, %v1330_v55  ;;  %v89_v61 = vpop.permute.xlu1 %88  ;;  %1133 = vmatpush3.bf16.msra.mxu0 %v1225_v45 }
  0xb0   :  { %v86_v62 = vpop.permute.xlu0 %85  ;;  %vm101_vm14 = vcmp.eq.s32.totalorder %v89_v61, %v71_v49  ;;  %1134 = vmatprep.subr.bf16.mxu0 %v1329_v4 }
  0xb1   :  { %vm100_vm13 = vcmp.eq.s32.totalorder %v86_v62, %v71_v49 }
  0xb2   :  { %1104 = vmatmul.mubr.msk.f32.gmra.mrb[2].mxu0 %vm99_vm12, %v1330_v55 }
  0xb3   :  { %1106 = vmatprep.mubr.msk.f32.mxu0 %vm100_vm13, %v1330_v55  ;;  %v95_v63 = vpop.permute.xlu1 %94 }
  0xb4   :  { %v92_v0 = vpop.permute.xlu0 %91  ;;  %vm103_vm0 = vcmp.eq.s32.totalorder %v95_v63, %v71_v49 }
  0xb5   :  { %vm102_vm15 = vcmp.eq.s32.totalorder %v92_v0, %v71_v49  ;;  %v1226_v49 = vld [vmem:[#allocation5 + $0x8] sm:$0xff]  }
  0xb6   :  { %1107 = vmatmul.mubr.msk.f32.gmra.mrb[4].mxu0 %vm101_vm14, %v1330_v55 }
  0xb7   :  { %1109 = vmatprep.mubr.msk.f32.mxu0 %vm102_vm15, %v1330_v55  ;;  %v169_v6 = vpop.permute.xlu1 %168  ;;  %1135 = vmatpush3.bf16.msra.mxu0 %v1226_v49 }
  0xb8   :  { %v164_v7 = vpop.permute.xlu0 %163  ;;  %v206_v15 = vmul.f32 %v204_v8, %v169_v6  ;;  %1136 = vmatprep.subr.bf16.mxu0 %v1329_v4 }
  0xb9   :  { %v205_v16 = vmul.f32 %v204_v8, %v164_v7 }
  0xba   :  { %1110 = vmatmul.mubr.msk.f32.gmra.mrb[6].mxu0 %vm103_vm0, %v1330_v55 }
  0xbb   :  { %v221_v10 = vpop.permute.xlu1 %220  ;;  %1148 = vmatprep.mubr.msk.bf16.mxu0 %vm1331_vm1, %v1329_v4  ;;  %1137 = vmatpush3.bf16.msra.mxu0 %v1227_v53 }
  0xbc   :  { %v216_v14 = vpop.permute.xlu0 %215  ;;  %v258_v17 = vmul.f32 %v256_v9, %v221_v10  ;;  %1138 = vmatprep.subr.bf16.mxu0 %v1329_v4 }
  0xbd   :  { %v257_v18 = vmul.f32 %v256_v9, %v216_v14 }
  0xbe   :  { %v1628_v5 = vadd.f32 %v258_v17, %v206_v15 }
  0xbf   :  { %v1630_v22 = vadd.f32 %v257_v18, %v205_v16  ;;  %v226_v24 = vpop.permute.xlu1 %225  ;;  %1139 = vmatpush3.bf16.msra.mxu0 %v1228_v54 }
  0xc0   :  { %v174_v26 = vpop.permute.xlu0 %173  ;;  %v259_v27 = vmul.f32 %v256_v9, %v226_v24  ;;  %1140 = vmatprep.subr.bf16.mxu0 %v1329_v4 }
  0xc1   :  { %v207_v11 = vmul.f32 %v204_v8, %v174_v26 }
  0xc3   :  { %v1632_v12 = vadd.f32 %v259_v27, %v207_v11  ;;  %v231_v19 = vpop.permute.xlu1 %230 }
  0xc4   :  { %v179_v25 = vpop.permute.xlu0 %178  ;;  %v260_v20 = vmul.f32 %v256_v9, %v231_v19 }
  0xc5   :  { %v208_v28 = vmul.f32 %v204_v8, %v179_v25 }
  0xc7   :  { %v1634_v30 = vadd.f32 %v260_v20, %v208_v28  ;;  %v236_v31 = vpop.permute.xlu1 %235 }
  0xc8   :  { %v184_v32 = vpop.permute.xlu0 %183  ;;  %v261_v33 = vmul.f32 %v256_v9, %v236_v31 }
  0xc9   :  { %v209_v34 = vmul.f32 %v204_v8, %v184_v32 }
  0xcb   :  { %v1636_v35 = vadd.f32 %v261_v33, %v209_v34  ;;  %v241_v36 = vpop.permute.xlu1 %240 }
  0xcc   :  { %v189_v37 = vpop.permute.xlu0 %188  ;;  %v262_v13 = vmul.f32 %v256_v9, %v241_v36 }
  0xcd   :  { %v210_v21 = vmul.f32 %v204_v8, %v189_v37 }
  0xcf   :  { %v1638_v38 = vadd.f32 %v262_v13, %v210_v21  ;;  %v246_v39 = vpop.permute.xlu1 %245 }
  0xd0   :  { %v194_v40 = vpop.permute.xlu0 %193  ;;  %v263_v41 = vmul.f32 %v256_v9, %v246_v39 }
  0xd1   :  { %v211_v42 = vmul.f32 %v204_v8, %v194_v40 }
  0xd3   :  { %v1640_v43 = vadd.f32 %v263_v41, %v211_v42  ;;  %v251_v44 = vpop.permute.xlu1 %250 }
  0xd4   :  { %v199_v46 = vpop.permute.xlu0 %198  ;;  %v264_v47 = vmul.f32 %v256_v9, %v251_v44 }
  0xd5   :  { %v212_v48 = vmul.f32 %v204_v8, %v199_v46 }
  0xd7   :  { %v1642_v50 = vadd.f32 %v264_v47, %v212_v48  ;;  %v1203_v55 = vpop.permute.xlu1 %1202 }
  0xd8   :  { %v1198_v57 = vpop.permute.xlu0 %1197  ;;  %v1205_v9 = vunpack.i.h.bf16 %v1203_v55  ;;  %v1204_v17 = vunpack.i.l.bf16 %v1203_v55 }
  0xd9   :  { %v1200_v61 = vunpack.i.h.bf16 %v1198_v57  ;;  %v1199_v0 = vunpack.i.l.bf16 %v1198_v57 }
  0xdb   :  { %v1213_v6 = vpop.permute.xlu1 %1212 }
  0xdc   :  { %v1208_v10 = vpop.permute.xlu0 %1207  ;;  %v1215_v37 = vunpack.i.h.bf16 %v1213_v6  ;;  %v1214_v40 = vunpack.i.l.bf16 %v1213_v6 }
  0xdd   :  { %v1209_v32 = vunpack.i.l.bf16 %v1208_v10 }
  0xdf   :  { %v663_v33 = vpop.permute.xlu1 %662 }
  0xe0   :  { %v658_v13 = vpop.permute.xlu0 %657 }
  0xe3   :  { %v673_v49 = vpop.permute.xlu1 %672 }
 0x181   :  { %v1102_v60 = vpop.f32.mrb[0].mxu0 }
 0x182   :  { %v345_v62 = vadd.f32 %v1102_v60, %v1628_v5  ;;  %v339_v63 = vpop.f32.mrb[1].mxu0  ;;  %v668_v60 = vpop.permute.xlu0 %667 }
 0x183   :  { %v340_v1 = vadd.f32 %v339_v63, %v1630_v22  ;;  %v1210_v22 = vunpack.i.h.bf16 %v1208_v10 }
 0x184   :  { %v584_v2 = vmul.f32 %v1200_v61, %v345_v62 }
 0x185   :  { %v583_v7 = vmul.f32 %v1199_v0, %v340_v1  ;;  %v1105_v8 = vpop.f32.mrb[2].mxu0 }
 0x186   :  { %v597_v14 = vrot.slane %v584_v2, 4  ;;  %v355_v15 = vadd.f32 %v1105_v8, %v1634_v30  ;;  %v349_v16 = vpop.f32.mrb[3].mxu0 }
 0x187   :  { %v591_v18 = vrot.slane %v583_v7, 4  ;;  %v350_v24 = vadd.f32 %v349_v16, %v1632_v12 }
 0x188   :  { %v598_v26 = vadd.f32 %v597_v14, %v584_v2  ;;  %v586_v5 = vmul.f32 %v1205_v9, %v355_v15 }
 0x189   :  { %v592_v27 = vadd.f32 %v591_v18, %v583_v7  ;;  %v585_v11 = vmul.f32 %v1204_v17, %v350_v24  ;;  %v1108_v19 = vpop.f32.mrb[4].mxu0 }
 0x18a   :  { %v599_v25 = vrot.slane %v598_v26, 2  ;;  %v609_v20 = vrot.slane %v586_v5, 4  ;;  %v365_v28 = vadd.f32 %v1108_v19, %v1638_v38  ;;  %v359_v31 = vpop.f32.mrb[5].mxu0 }
 0x18b   :  { %v593_v34 = vrot.slane %v592_v27, 2  ;;  %v603_v30 = vrot.slane %v585_v11, 4  ;;  %v360_v36 = vadd.f32 %v359_v31, %v1636_v35 }
 0x18c   :  { %v600_v12 = vadd.f32 %v599_v25, %v598_v26  ;;  %v610_v21 = vadd.f32 %v609_v20, %v586_v5  ;;  %v588_v39 = vmul.f32 %v1210_v22, %v365_v28  ;;  %v683_v5 = vpop.permute.xlu1 %682  ;;  %v678_v25 = vpop.permute.xlu0 %677 }
 0x18d   :  { %v594_v41 = vadd.f32 %v593_v34, %v592_v27  ;;  %v604_v42 = vadd.f32 %v603_v30, %v585_v11  ;;  %v587_v44 = vmul.f32 %v1209_v32, %v360_v36  ;;  %v1111_v46 = vpop.f32.mrb[6].mxu0 }
 0x18e   :  { %v601_v47 = vrot.slane %v600_v12, 1  ;;  %v611_v38 = vrot.slane %v610_v21, 2  ;;  %v621_v48 = vrot.slane %v588_v39, 4  ;;  %v375_v58 = vadd.f32 %v1111_v46, %v1642_v50  ;;  %v369_v3 = vpop.f32.mrb[7].mxu0 }
 0x18f   :  { %v595_v56 = vrot.slane %v594_v41, 1  ;;  %v605_v59 = vrot.slane %v604_v42, 2  ;;  %v615_v35 = vrot.slane %v587_v44, 4  ;;  %v370_v51 = vadd.f32 %v369_v3, %v1640_v43 }
 0x190   :  { %v602_v52 = vadd.f32 %v601_v47, %v600_v12  ;;  %v612_v23 = vadd.f32 %v611_v38, %v610_v21  ;;  %v622_v29 = vadd.f32 %v621_v48, %v588_v39  ;;  %v590_v45 = vmul.f32 %v1215_v37, %v375_v58  ;;  %v688_v38 = vpop.permute.xlu0 %687 }
 0x191   :  { %v596_v53 = vadd.f32 %v595_v56, %v594_v41  ;;  %v606_v54 = vadd.f32 %v605_v59, %v604_v42  ;;  %v616_v55 = vadd.f32 %v615_v35, %v587_v44  ;;  %v589_v57 = vmul.f32 %v1214_v40, %v370_v51  ;;  %v693_v42 = vpop.permute.xlu1 %692 }
 0x192   :  { %v696_v61 = vmul.f32 %v663_v33, %v602_v52  ;;  %v613_v62 = vrot.slane %v612_v23, 1  ;;  %v623_v63 = vrot.slane %v622_v29, 2  ;;  %v633_v50 = vrot.slane %v590_v45, 4 }
 0x193   :  { %v695_v0 = vmul.f32 %v658_v13, %v596_v53  ;;  %v607_v1 = vrot.slane %v606_v54, 1  ;;  %v617_v2 = vrot.slane %v616_v55, 2  ;;  %v627_v6 = vrot.slane %v589_v57, 4 }
 0x194   :  { %v704_v7 = vpack.c.bf16 %v696_v61, %v696_v61  ;;  %v614_v43 = vadd.f32 %v613_v62, %v612_v23  ;;  %v624_v8 = vadd.f32 %v623_v63, %v622_v29  ;;  %v634_v9 = vadd.f32 %v633_v50, %v590_v45  ;;  %v1232_v61 = vld [vmem:[#allocation5 + $0x38] sm:$0xff]   ;;  %v1008_v62 = vld [vmem:[%s1693_s6] ss:$0 sm:$0xff]  ;;  %s1295_s6 = scalar_lea.vmem %s975_s12, 128 }
 0x195   :  { %v703_v10 = vpack.c.bf16 %v695_v0, %v695_v0  ;;  %v608_v14 = vadd.f32 %v607_v1, %v606_v54  ;;  %v618_v15 = vadd.f32 %v617_v2, %v616_v55  ;;  %v628_v16 = vadd.f32 %v627_v6, %v589_v57  ;;  %v1229_v55 = vld [vmem:[#allocation5 + $0x20] sm:$0xff]   ;;  %v1230_v57 = vld [vmem:[#allocation5 + $0x28] sm:$0xff]   ;;  %p1296_p2 = scmp.ne.s32.totalorder %s975_s12, %s1295_s6  ;;  %p1301_p4 = scmp.lt.s32.totalorder %s1295_s6, %s1295_s6 }
 0x196   :  { %v743_v17 = vunpack.c.l.b16 %v704_v7  ;;  %v698_v18 = vmul.f32 %v673_v49, %v614_v43  ;;  %v625_v24 = vrot.slane %v624_v8, 1  ;;  %v635_v26 = vrot.slane %v634_v9, 2  ;;  %1141 = vmatpush3.bf16.msra.mxu0 %v1229_v55  ;;  %v1017_v43 = vld [vmem:[%s1695_s8] ss:$0 sm:$0xff] }
 0x197   :  { %v742_v27 = vunpack.c.l.b16 %v703_v10  ;;  %v697_v11 = vmul.f32 %v668_v60, %v608_v14  ;;  %v619_v19 = vrot.slane %v618_v15, 1  ;;  %v629_v22 = vrot.slane %v628_v16, 2  ;;  %1142 = vmatprep.subr.bf16.mxu0 %v1329_v4  ;;  %v1231_v60 = vld [vmem:[#allocation5 + $0x30] sm:$0xff]   ;;  %p1302_p5 = por %p1301_p4, %p1300_p3 }
 0x198   :  { %v706_v20 = vpack.c.bf16 %v698_v18, %v698_v18  ;;  %v626_v28 = vadd.f32 %v625_v24, %v624_v8  ;;  %v636_v31 = vadd.f32 %v635_v26, %v634_v9 }
 0x199   :  { %v751_v32 = vsel %vm750_vm2, %v743_v17, %v742_v27  ;;  %v705_v33 = vpack.c.bf16 %v697_v11, %v697_v11  ;;  %v620_v34 = vadd.f32 %v619_v19, %v618_v15  ;;  %v630_v30 = vadd.f32 %v629_v22, %v628_v16  ;;  %p1303_p6 = pnand %p1302_p5, %p1296_p2 }
 0x19a   :  { %v700_v36 = vmul.f32 %v683_v5, %v626_v28  ;;  %v637_v37 = vrot.slane %v636_v31, 1  ;;  %v745_v39 = vunpack.c.l.b16 %v706_v20  ;;  %1143 = vmatpush3.bf16.msra.mxu0 %v1230_v57 }
 0x19b   :  { %v744_v13 = vunpack.c.l.b16 %v705_v33  ;;  %v699_v12 = vmul.f32 %v678_v25, %v620_v34  ;;  %v631_v21 = vrot.slane %v630_v30, 1  ;;  %1144 = vmatprep.subr.bf16.mxu0 %v1329_v4 }
 0x19c   :  { %v708_v40 = vpack.c.bf16 %v700_v36, %v700_v36  ;;  %v638_v41 = vadd.f32 %v637_v37, %v636_v31 }
 0x19d   :  { %v707_v44 = vpack.c.bf16 %v699_v12, %v699_v12  ;;  %v632_v46 = vadd.f32 %v631_v21, %v630_v30  ;;  %v753_v47 = vsel %vm752_vm3, %v744_v13, %v751_v32 }
 0x19e   :  { %v702_v48 = vmul.f32 %v693_v42, %v638_v41  ;;  %v755_v58 = vsel %vm754_vm4, %v745_v39, %v753_v47  ;;  %v747_v59 = vunpack.c.l.b16 %v708_v40  ;;  %1145 = vmatpush3.bf16.msra.mxu0 %v1231_v60 }
 0x19f   :  { %v746_v3 = vunpack.c.l.b16 %v707_v44  ;;  %v701_v56 = vmul.f32 %v688_v38, %v632_v46  ;;  %1146 = vmatprep.subr.bf16.mxu0 %v1329_v4 }
 0x1a0   :  { %v710_v35 = vpack.c.bf16 %v702_v48, %v702_v48 }
 0x1a1   :  { %v709_v51 = vpack.c.bf16 %v701_v56, %v701_v56  ;;  %v757_v52 = vsel %vm756_vm5, %v746_v3, %v755_v58 }
 0x1a2   :  { %v759_v23 = vsel %vm758_vm6, %v747_v59, %v757_v52  ;;  %v749_v45 = vunpack.c.l.b16 %v710_v35  ;;  %1147 = vmatpush3.bf16.msra.mxu0 %v1232_v61 }
 0x1a3   :  { %v748_v29 = vunpack.c.l.b16 %v709_v51 }
 0x1a5   :  { %v761_v49 = vsel %vm760_vm7, %v748_v29, %v759_v23 }
 0x1a6   :  { %v763_v53 = vsel %vm762_vm8, %v749_v45, %v761_v49 }
 0x1a7   :  { %v764_v54 = vpack.c.b16 %v763_v53, %v763_v53 }
 0x1a9   :  { %1129 = vmatmul.mubr.bf16.vlgmr.msra.gmra.mrb[0].mxu1 %v764_v54 }
 0x27c   :  { %v848_v63 = vpop.f32.mrb[0].mxu1 }
 0x27d   :  { %v849_v50 = vadd.f32 %v1008_v62, %v848_v63  ;;  %v1130_v0 = vpop.f32.mrb[1].mxu1 }
 0x27e   :  { %v851_v1 = vpop.f32.mrb[2].mxu1 }
 0x27f   :  { %1249 = vtanh.f32 %v849_v50  ;;  %v1131_v2 = vpop.f32.mrb[3].mxu1 }
 0x289   :  { %v1250_v6 = vpop.eup %1249 }
 0x28a   :  { %v855_v7 = vpack.c.bf16 %v1250_v6, %v1250_v6 }
 0x28c   :  { %1149 = vmatmul.mubr.bf16.vlgmr.msra.gmra.mrb[8].mxu0 %v855_v7 }
 0x35f   :  { %v961_v4 = vpop.f32.mrb[8].mxu0 }
 0x360   :  { %v962_v8 = vadd.f32 %v1017_v43, %v961_v4  ;;  %v1150_v9 = vpop.f32.mrb[9].mxu0 }
 0x361   :  { %v964_v10 = vpop.f32.mrb[10].mxu0 }
 0x362   :  { %967 = vst [vmem:[#allocation7] sm:$0xff] %v962_v8  ;;  %v1151_v14 = vpop.f32.mrb[11].mxu0 }
 0x363   :  { %1306 = shalt.err (!%p1303_p6)
}
 0x364   :  { %s1307_s8 = scalar_lea.hbm %s1696_s9, 128 }
 0x365   :  { %p1308_p7 = scmp.ne.s32.totalorder %s1696_s9, %s1307_s8  ;;  %p1311_p8 = scmp.lt.u32.totalorder %s1307_s8, %s1696_s9 }
 0x367   :  { %p1313_p9 = pnand %p1311_p8, %p1308_p7 }
 0x369   :  { %1316 = shalt.err (!%p1313_p9)
}
 0x36a   :  { %977 = dma.vmem_to_hbm [thread:$0]  %s975_s12, 128, %s1696_s9, [#allocation4]  }
 0x36b   :  { %1321 = dma.done.wait [#allocation4], 128  }
 0x36c   :  { %1322 = vsyncadd [#allocation4], 4294967168 }
 0x36d   :  { %981 = vsyncpa [#allocation3], 1 }
 0x36e   :  { %982 = vsyncpa [#allocation6], 1 }
 0x36f   :  { %983 = vsyncpa [#allocation4], 1 }

</bundles_post_ra>
